<compile_context>
chip_gen: v5e
topology: v5e:2x2
jax: 0.10.0
libtpu: 0.0.40
codegen_flags: <defaults>
</compile_context>

<pallas_src>
from collections import OrderedDict, namedtuple
import functools
import math

import jax
import jax.numpy as jnp
from jax.experimental import pallas as pl
from jax.experimental.pallas import tpu as pltpu


Binding = namedtuple("Binding", ("name", "dtype", "shape", "data"))

_MIB = 1024 * 1024
_SMALL_INPUT_BYTES = 1 * _MIB   # below this, XLA's fused convert beats kernel launch


# ---------------------------------------------------------------------------
# Pallas kernel: cast + copy one lane-dense tile of the input into the
# input-binding buffer.  This is the only compute defined by the PyTorch code
# (the engine itself is an opaque serialized blob).
# ---------------------------------------------------------------------------
def _cast_copy_kernel(src_ref, dst_ref):
    dst_ref[...] = src_ref[...].astype(dst_ref.dtype)


def _tpu_vmem_bytes():
    """Best-effort physical VMEM query; fall back to the smallest (v7x) size."""
    try:
        return int(pltpu.get_tpu_info().vmem_capacity_bytes)
    except Exception:
        return 64 * _MIB


def _block_cap_bytes(phys_vmem):
    # Per-block byte cap (measured against the larger of the two dtypes).
    # 8 MiB keeps the 0.35 us per-grid-step overhead < 10% of the step even at
    # v7x's 3.2 TB/s; 4 MiB if VMEM is unexpectedly small.
    return 8 * _MIB if phys_vmem >= 64 * _MIB else 4 * _MIB


def _pick_lane_dense(numel):
    """Pick a (rows, lanes) 2D view with lanes a multiple of 128 (unmasked vst),
    preferring wide lanes while keeping >= 8 rows when possible."""
    if numel % 128 != 0:
        return None
    fallback = None
    for lanes in (2048, 1024, 512, 256, 128):
        if numel % lanes == 0:
            rows = numel // lanes
            if rows >= 8:
                return rows, lanes
            if fallback is None:
                fallback = (rows, lanes)
    return fallback


def _block_rows(rows, lanes, in_isz, out_isz, cap_bytes):
    """Row-block size: multiple of the packed sublane granule, per-block bytes
    <= cap_bytes, >= 2 grid blocks when possible (v7x megacore), and an exact
    divisor of rows when one exists (no masked trailing block)."""
    granule = 8 * max(1, 4 // min(in_isz, out_isz))
    if rows <= granule:
        return rows                              # full extent along rows
    max_elems = cap_bytes // max(in_isz, out_isz)
    cap = max(granule, (max_elems // lanes) // granule * granule)
    if rows >= 2 * granule:
        # guarantee >= 2 grid blocks so both v7x TensorCores issue DMAs
        half = ((rows // 2) // granule) * granule
        cap = max(granule, min(cap, half))
    cap = min(cap, rows)
    best = None
    for d in range(granule, cap + 1, granule):   # host-side, memoized downstream
        if rows % d == 0:
            best = d
    return best if best is not None else cap


@functools.lru_cache(maxsize=None)
def _build_copy_call(rows, lanes, br, in_dtype_name, out_dtype_name,
                     vmem_limit, bytes_accessed):
    """Memoized jitted pallas_call: steady-state forward() is dispatch-only."""
    del in_dtype_name  # cache-key only (distinct compiled copy per input dtype)
    out_dtype = jnp.dtype(out_dtype_name)
    return jax.jit(pl.pallas_call(
        _cast_copy_kernel,
        out_shape=jax.ShapeDtypeStruct((rows, lanes), out_dtype),
        grid=(pl.cdiv(rows, br),),
        in_specs=[pl.BlockSpec((br, lanes), lambda i: (i, 0))],
        out_specs=pl.BlockSpec((br, lanes), lambda i: (i, 0)),
        compiler_params=pltpu.CompilerParams(
            dimension_semantics=("parallel",),
            vmem_limit_bytes=int(vmem_limit)),
        cost_estimate=pl.CostEstimate(
            flops=0, transcendentals=0, bytes_accessed=int(bytes_accessed)),
    ))


def _bind_input_copy(im_flat, rows, lanes, out_dtype):
    """Tiled, lane-dense cast+copy of the flattened input into a new binding buffer."""
    in_isz = jnp.dtype(im_flat.dtype).itemsize
    out_isz = jnp.dtype(out_dtype).itemsize
    phys = _tpu_vmem_bytes()
    br = _block_rows(rows, lanes, in_isz, out_isz, _block_cap_bytes(phys))
    in_blk = br * lanes * in_isz
    out_blk = br * lanes * out_isz
    # double-buffered in+out blocks plus headroom; always >= compiler comfort floor,
    # never anywhere near v7x's 64 MiB physical VMEM.
    vmem_limit = min(max(2 * (in_blk + out_blk) + 4 * _MIB, 16 * _MIB), 48 * _MIB)
    bytes_accessed = rows * lanes * (in_isz + out_isz)
    call = _build_copy_call(rows, lanes, br,
                            jnp.dtype(im_flat.dtype).name, jnp.dtype(out_dtype).name,
                            vmem_limit, bytes_accessed)
    return call(im_flat)


# ---------------------------------------------------------------------------
# JAX/Pallas analogue of StaticModel (single-input engines)
# ---------------------------------------------------------------------------
class StaticModelPallas:
    def __init__(self, binding_specs, small_input_bypass_bytes=_SMALL_INPUT_BYTES):
        # binding_specs: OrderedDict name -> (shape, dtype); first key is the input.
        # Matches: torch.from_numpy(np.ones(shape, dtype)).cuda()  -- built ONCE.
        self.bindings = OrderedDict()
        for name, (shape, dtype) in binding_specs.items():
            data = jnp.ones(shape, dtype)
            self.bindings[name] = Binding(name, data.dtype, tuple(shape), data)
        self.keys = list(self.bindings.keys())
        self.small_input_bypass_bytes = small_input_bypass_bytes

    def forward(self, im):
        if isinstance(im, list):
            # TODO(synk): original rebinds one pointer per list entry; only the
            # single-input case is implemented here (first tensor is the input).
            im = im[0]
        outfrom = 1

        in_key = self.keys[0]
        in_bind = self.bindings[in_key]
        numel = math.prod(in_bind.shape)
        if im.size != numel:
            raise ValueError(
                f"input has {im.size} elements, input binding expects {numel}")

        in_isz = jnp.dtype(im.dtype).itemsize
        flat = _pick_lane_dense(numel)
        if im.dtype == in_bind.dtype:
            # Original forward() only rebinds a pointer: a pure alias, no copy needed.
            new_data = im.reshape(in_bind.shape)
        elif numel * in_isz < self.small_input_bypass_bytes or flat is None:
            # Tiny inputs: pallas_call launch dwarfs the copy; ragged element counts
            # (numel % 128 != 0): fall back to XLA's fused convert.
            new_data = im.reshape(in_bind.shape).astype(in_bind.dtype)
        else:
            rows, lanes = flat
            out2d = _bind_input_copy(im.reshape((rows, lanes)),
                                     rows, lanes, in_bind.dtype)
            new_data = out2d.reshape(in_bind.shape)

        self.bindings[in_key] = in_bind._replace(data=new_data)

        # TODO(synk): context.execute_v2 runs the opaque serialized TensorRT engine;
        # output bindings keep their ones-initialized buffers from __init__ (no rewrite).
        out_keys = self.keys[outfrom:]
        if len(self.keys) == outfrom + 1:
            return self.bindings[out_keys[0]].data
        return [self.bindings[k].data for k in out_keys]


if __name__ == "__main__":
    key = jax.random.PRNGKey(0)

    # ---- 1) Small NCHW demo (typical module shapes): small-input bypass path ----
    x_small = jax.random.normal(key, (2, 4, 16, 16), jnp.float32)
    specs_small = OrderedDict([
        ("images", ((2, 4, 16, 16), jnp.bfloat16)),   # input binding
        ("output", ((2, 4, 16, 16), jnp.bfloat16)),   # output binding
    ])
    m_small = StaticModelPallas(specs_small)
    out_small = m_small.forward(x_small)
    jax.block_until_ready(out_small)
    assert m_small.bindings["images"].data.dtype == jnp.dtype(jnp.bfloat16)
    assert jnp.allclose(m_small.bindings["images"].data.astype(jnp.float32),
                        x_small.astype(jnp.bfloat16).astype(jnp.float32),
                        rtol=2e-2, atol=2e-2)
    assert jnp.allclose(out_small.astype(jnp.float32),
                        jnp.ones((2, 4, 16, 16), jnp.float32))

    # ---- 2) Moderate demo (2 MiB input): exercises the Pallas cast+copy kernel ----
    key2 = jax.random.fold_in(key, 1)
    x_big = jax.random.normal(key2, (2, 32, 64, 128), jnp.float32)
    specs_big = OrderedDict([
        ("images", ((2, 32, 64, 128), jnp.bfloat16)),
        ("output", ((2, 32, 64, 128), jnp.bfloat16)),
    ])
    m_big = StaticModelPallas(specs_big)
    out_big = m_big.forward(x_big)        # dtype differs & >= cutoff -> Pallas kernel
    jax.block_until_ready(out_big)
    jax.block_until_ready(m_big.bindings["images"].data)

    got = m_big.bindings["images"].data.astype(jnp.float32)
    want = x_big.astype(jnp.bfloat16).astype(jnp.float32)
    assert m_big.bindings["images"].data.dtype == jnp.dtype(jnp.bfloat16)
    assert jnp.allclose(got, want, rtol=2e-2, atol=2e-2)
    assert jnp.allclose(out_big.astype(jnp.float32),
                        jnp.ones((2, 32, 64, 128), jnp.float32))

    # Second call hits the memoized/jitted pallas_call (dispatch-only steady state).
    out_big2 = m_big.forward(x_big)
    jax.block_until_ready(out_big2)
    jax.block_until_ready(m_big.bindings["images"].data)

    print("KERNEL_OK")
</pallas_src>

<mosaic_0001>
module attributes {stable_mosaic.version = 11 : i64} {
  func.func @_cast_copy_kernel(%arg0: i32, %arg1: memref<128x2048xf32, #tpu.memory_space<vmem>>, %arg2: memref<128x2048xbf16, #tpu.memory_space<vmem>>) attributes {dimension_semantics = [#tpu.dimension_semantics<parallel>], iteration_bounds = array<i64: 2>, scalar_prefetch = 0 : i64, scratch_operands = 0 : i64, tpu.core_type = #tpu.core_type<tc>, window_params = [{transform_indices = @transform_0, window_bounds = array<i64: 128, 2048>}, {transform_indices = @transform_1, window_bounds = array<i64: 128, 2048>}]} {
    %c0 = arith.constant 0 : index
    %c0_0 = arith.constant 0 : index
    %0 = vector.load %arg1[%c0, %c0_0] : memref<128x2048xf32, #tpu.memory_space<vmem>>, vector<128x2048xf32>
    %1 = arith.truncf %0 : vector<128x2048xf32> to vector<128x2048xbf16>
    %c0_1 = arith.constant 0 : index
    %c0_2 = arith.constant 0 : index
    %2 = vector.load %arg2[%c0_1, %c0_2] : memref<128x2048xbf16, #tpu.memory_space<vmem>>, vector<128x2048xbf16>
    tpu.vector_store %arg2[%c0_1, %c0_2], %1 {strides = array<i32>} : memref<128x2048xbf16, #tpu.memory_space<vmem>>, vector<128x2048xbf16>,
    return
  }
  func.func @transform_0(%arg0: i32) -> (i32, i32) {
    %c0_i32 = arith.constant 0 : i32
    %c0_i32_0 = arith.constant 0 : i32
    return %arg0, %c0_i32 : i32, i32
  }
  func.func @transform_1(%arg0: i32) -> (i32, i32) {
    %c0_i32 = arith.constant 0 : i32
    %c0_i32_0 = arith.constant 0 : i32
    return %arg0, %c0_i32 : i32, i32
  }
}

</mosaic_0001>

<bundles_post_ra>
// kernel: tpu_custom_call.1
= control target key start
LH: loop header
LB: loop body
LE: loop exit
PB: predicated region body
PF: predicated region fallthrough
CT: control target
= control target key end

     0   :  { %6 = vsyncpa [#allocation3], 0  ;;  %s1441_s0 = inlined_call_operand.hbm [shape: f32[256,2048], index: 0, kind: input, shape index: {}]   ;;  %s1442_s1 = inlined_call_operand.hbm [shape: bf16[256,2048], index: 1, kind: output, shape index: {}]  }
   0x1   :  { %8 = vsyncpa [#allocation3 + $0x1], 0 }
   0x2   :  { %9 = vsyncpa [#allocation4], 0 }
   0x3   :  { %11 = vsyncpa [#allocation4 + $0x1], 0  ;;  %s924_s6 = smov 0   ;;  %s926_s7 = smov 0  }
   0x4   :  { %s928_s8 = smov 0   ;;  %s930_s9 = smov 0  }
   0x5 LB: > { %s945_s10 = sadd.s32 4294967295, %s908_s9   ;;  %s742_s11 = sadd.s32 4294967294, %s908_s9   ;;  %s908_s9 = sphi %s930_s9, %s1452_s9   ;;  %s904_s8 = sphi %s928_s8, %s1451_s8   ;;  %s900_s7 = sphi %s926_s7, %s1450_s7   ;;  %s896_s6 = sphi %s924_s6, %s1449_s6  }
   0x6   : > { %s949_s12 = sadd.s32 1, %s908_s9   ;;  %s24_s13 = sadd.s32 1, %s904_s8 }
   0x7   : > { %s21_s14 = ssub.s32 %s908_s9, %s949_s12  ;;  %p31_p0 = scmp.ne.s32.totalorder %s904_s8, %s900_s7 }
   0x8   : > { %p22_p1 = scmp.eq.s32.totalorder %s21_s14, 0  ;;  %p32_p2 = scmp.eq.s32.totalorder %s908_s9, 0 }
   0x9   : > { %p37_p3 = scmp.ne.s32.totalorder %s900_s7, %s896_s6  ;;  %p38_p4 = scmp.eq.s32.totalorder %s945_s10, 0 }
   0xa   : > { %s961_s15 = scalar_select %p22_p1, %s904_s8, %s24_s13  }
   0xb   : > { %p963_p5 = por %p32_p2, %p31_p0  ;;  %p967_p6 = por %p38_p4, %p37_p3 }
   0xc   : > { %p61_p7 = scmp.eq.s32.totalorder %s945_s10, 1  ;;  %p67_p8 = scmp.eq.s32.totalorder %s742_s11, 1 }
   0xd   : > { %p774_p10 = scmp.lt.s32.totalorder %s908_s9, 2  ;;  %s87_s20 = sand.u32 1, %s904_s8  }
   0xe   : > { %p974_p11 = por %p61_p7, %p31_p0  ;;  %p978_p12 = por %p67_p8, %p37_p3 }
   0xf   : > { %s759_s21 = sshll.u32 %s908_s9, 11  ;;  %s745_s22 = sshll.u32 %s87_s20, 11 }
  0x10   : > { %s97_s25 = scalar_lea.hbm %s1441_s0, %s759_s21  ;;  %s91_s27 = scalar_lea.vmem [#allocation2], %s745_s22 }
  0x11   : > { %s98_s26 = sshll.u32 %s97_s25, 4  ;;  %s100_s28 = sshll.u32 %s91_s27, 4  ;;  %s99_s26 = int_to_ptr.hbm [resolvable:$true] %s98_s26  ;;  %s101_s28 = int_to_ptr.vmem [resolvable:$true] %s100_s28 }
  0x12   : > { %p989_p13 = pnand %p774_p10, %p963_p5  ;;  %p749_p0 = scmp.ge.s32.totalorder %s908_s9, 1 }
  0x13   : > { %p108_p1 = scmp.lt.s32.totalorder %s908_s9, 3  ;;  %s88_s30 = scalar_lea.sflag [#allocation3], %s87_s20 }
  0x14   : > { %s812_s2 = sshra.s32 %s99_s26, 4  ;;  %p816_p3 = pneg %p989_p13  ;;  %s813_s2 = int_to_ptr.hbm [resolvable:$true] %s812_s2 }
  0x15   : > { %s814_s3 = scalar_lea.hbm %s813_s2, 2048  ;;  %s819_s11 = scalar_lea.hbm %s1441_s0, 4096 }
  0x16   : > { %p815_p2 = scmp.ne.s32.totalorder %s813_s2, %s814_s3  ;;  %p820_p5 = scmp.lt.s32.totalorder %s813_s2, %s1441_s0 }
  0x17   : > { %p821_p8 = scmp.lt.s32.totalorder %s819_s11, %s814_s3 }
  0x18   : > { %p817_p4 = pnand %p816_p3, %p815_p2 }
  0x19   : > { %p822_p10 = por %p821_p8, %p820_p5 }
  0x1a   : > { %p818_p7 = pneg %p817_p4 }
  0x1c   : > { %p823_p9 = pnand %p822_p10, %p818_p7 }
  0x1e   : > { %826 = shalt.err (!%p823_p9)
}
  0x1f   : > { %s910_s16 = smov 2048   ;;  %s911_s20 = smov 128  }
  0x20   : > { %769 = dma.hbm_to_vmem [thread:$0]  (!%p989_p13), %s99_s26, 32768, %s101_s28, %s88_s30, %s910_s16, %s910_s16, %s911_s20  }
  0x21   : > { %p109_p2 = pnand %p749_p0, %p108_p1 }
  0x22   : > { %s1010_s21 = sand.u32 (!%p109_p2), 1, %s900_s7  }
  0x23   : > { %112 = sbr.rel (%p109_p2) target bundleno = 175 (0xaf), region = 24  ;;  %s750_s22 = sshll.u32 (!%p109_p2), %s1010_s21, 11 }
  0x24   : > { %s115_s23 = scalar_lea.sflag (!%p109_p2), [#allocation3], %s1010_s21  ;;  %s1014_s24 = scalar_lea.vmem (!%p109_p2), [#allocation2], %s750_s22 }
  0x28   : > { %887 = dma.done.wait (%p967_p6), %s115_s23, 32768  }
  0x29   : > { %889 = vsyncadd (%p967_p6), %s115_s23, 4294934528  ;;  %s751_s25 = sshll.u32 %s1010_s21, 10  ;;  %v140_v0 = vld [vmem:[%s1014_s24] sm:$0xff]  ;;  %v141_v1 = vld [vmem:[%s1014_s24 + $0x8] sm:$0xff]  ;;  %s761_s26 = sshll.u32 %s945_s10, 10 }
  0x2a   : > { %v142_v2 = vld [vmem:[%s1014_s24 + $0x10] sm:$0xff]  ;;  %v396_v3 = vpack.c.bf16 %v141_v1, %v140_v0  ;;  %v143_v4 = vld [vmem:[%s1014_s24 + $0x18] sm:$0xff]  ;;  %v144_v5 = vld [vmem:[%s1014_s24 + $0x20] sm:$0xff]  ;;  %s1030_s17 = scalar_lea.vmem [#allocation5], %s751_s25  ;;  %s665_s28 = scalar_lea.hbm %s1442_s1, %s761_s26 }
  0x2b   : > { %v145_v6 = vld [vmem:[%s1014_s24 + $0x28] sm:$0xff]  ;;  %v397_v7 = vpack.c.bf16 %v143_v4, %v142_v2  ;;  %v146_v9 = vld [vmem:[%s1014_s24 + $0x30] sm:$0xff]  ;;  %v147_v10 = vld [vmem:[%s1014_s24 + $0x38] sm:$0xff]  ;;  %s666_s29 = sshll.u32 %s1030_s17, 4  ;;  %s668_s30 = sshll.u32 %s665_s28, 4  ;;  %s667_s29 = int_to_ptr.vmem [resolvable:$true] %s666_s29  ;;  %s669_s30 = int_to_ptr.hbm [resolvable:$true] %s668_s30 }
  0x2c   : > { %v398_v8 = vpack.c.bf16 %v145_v6, %v144_v5  ;;  %v148_v11 = vld [vmem:[%s1014_s24 + $0x40] sm:$0xff]  ;;  %524 = vst [vmem:[%s1030_s17] sm:$0xff] %v396_v3  ;;  %v399_v12 = vpack.c.bf16 %v147_v10, %v146_v9  ;;  %v149_v13 = vld [vmem:[%s1014_s24 + $0x48] sm:$0xff]  ;;  %v150_v14 = vld [vmem:[%s1014_s24 + $0x50] sm:$0xff]  ;;  %s653_s2 = scalar_lea.sflag [#allocation4], %s1010_s21  ;;  %s856_s3 = sshra.s32 %s669_s30, 4  ;;  %s857_s3 = int_to_ptr.hbm [resolvable:$true] %s856_s3 }
  0x2d   : > { %v151_v15 = vld [vmem:[%s1014_s24 + $0x58] sm:$0xff]  ;;  %525 = vst [vmem:[%s1030_s17 + $0x8] sm:$0xff] %v397_v7  ;;  %v400_v16 = vpack.c.bf16 %v149_v13, %v148_v11  ;;  %v152_v18 = vld [vmem:[%s1014_s24 + $0x60] sm:$0xff]  ;;  %v153_v19 = vld [vmem:[%s1014_s24 + $0x68] sm:$0xff]  ;;  %s858_s4 = scalar_lea.hbm %s857_s3, 1024  ;;  %s862_s13 = scalar_lea.hbm %s1442_s1, 2048 }
  0x2e   : > { %v401_v17 = vpack.c.bf16 %v151_v15, %v150_v14  ;;  %v154_v20 = vld [vmem:[%s1014_s24 + $0x70] sm:$0xff]  ;;  %526 = vst [vmem:[%s1030_s17 + $0x10] sm:$0xff] %v398_v8  ;;  %v402_v21 = vpack.c.bf16 %v153_v19, %v152_v18  ;;  %v155_v22 = vld [vmem:[%s1014_s24 + $0x78] sm:$0xff]  ;;  %v156_v23 = vld [vmem:[%s1014_s24 + $0x80] sm:$0xff]  ;;  %p859_p6 = scmp.ne.s32.totalorder %s857_s3, %s858_s4  ;;  %p863_p0 = scmp.lt.s32.totalorder %s857_s3, %s1442_s1 }
  0x2f   : > { %v157_v24 = vld [vmem:[%s1014_s24 + $0x88] sm:$0xff]  ;;  %527 = vst [vmem:[%s1030_s17 + $0x18] sm:$0xff] %v399_v12  ;;  %v403_v25 = vpack.c.bf16 %v155_v22, %v154_v20  ;;  %v158_v26 = vld [vmem:[%s1014_s24 + $0x90] sm:$0xff]  ;;  %v159_v27 = vld [vmem:[%s1014_s24 + $0x98] sm:$0xff]  ;;  %p864_p1 = scmp.lt.s32.totalorder %s862_s13, %s858_s4 }
  0x30   : > { %v160_v28 = vld [vmem:[%s1014_s24 + $0xa0] sm:$0xff]  ;;  %528 = vst [vmem:[%s1030_s17 + $0x20] sm:$0xff] %v400_v16  ;;  %v404_v29 = vpack.c.bf16 %v157_v24, %v156_v23  ;;  %v161_v30 = vld [vmem:[%s1014_s24 + $0xa8] sm:$0xff]  ;;  %v162_v31 = vld [vmem:[%s1014_s24 + $0xb0] sm:$0xff]  ;;  %v405_v33 = vpack.c.bf16 %v159_v27, %v158_v26  ;;  %p860_p9 = pnand %p859_p6, %p974_p11 }
  0x31   : > { %v163_v32 = vld [vmem:[%s1014_s24 + $0xb8] sm:$0xff]  ;;  %529 = vst [vmem:[%s1030_s17 + $0x28] sm:$0xff] %v401_v17  ;;  %v164_v34 = vld [vmem:[%s1014_s24 + $0xc0] sm:$0xff]  ;;  %v165_v35 = vld [vmem:[%s1014_s24 + $0xc8] sm:$0xff]  ;;  %v406_v36 = vpack.c.bf16 %v161_v30, %v160_v28  ;;  %p865_p3 = por %p864_p1, %p863_p0 }
  0x32   : > { %530 = vst [vmem:[%s1030_s17 + $0x30] sm:$0xff] %v402_v21  ;;  %v166_v37 = vld [vmem:[%s1014_s24 + $0xd0] sm:$0xff]  ;;  %v167_v38 = vld [vmem:[%s1014_s24 + $0xd8] sm:$0xff]  ;;  %v407_v39 = vpack.c.bf16 %v163_v32, %v162_v31  ;;  %v168_v40 = vld [vmem:[%s1014_s24 + $0xe0] sm:$0xff]  ;;  %v408_v42 = vpack.c.bf16 %v165_v35, %v164_v34  ;;  %p861_p13 = pneg %p860_p9 }
  0x33   : > { %531 = vst [vmem:[%s1030_s17 + $0x38] sm:$0xff] %v403_v25  ;;  %v169_v41 = vld [vmem:[%s1014_s24 + $0xe8] sm:$0xff]  ;;  %v170_v43 = vld [vmem:[%s1014_s24 + $0xf0] sm:$0xff]  ;;  %v171_v44 = vld [vmem:[%s1014_s24 + $0xf8] sm:$0xff]  ;;  %v409_v45 = vpack.c.bf16 %v167_v38, %v166_v37 }
  0x34   : > { %532 = vst [vmem:[%s1030_s17 + $0x40] sm:$0xff] %v404_v29  ;;  %v172_v46 = vld [vmem:[%s1014_s24 + $0x100] sm:$0xff]  ;;  %v173_v47 = vld [vmem:[%s1014_s24 + $0x108] sm:$0xff]  ;;  %v410_v48 = vpack.c.bf16 %v169_v41, %v168_v40  ;;  %v174_v49 = vld [vmem:[%s1014_s24 + $0x110] sm:$0xff]  ;;  %v411_v51 = vpack.c.bf16 %v171_v44, %v170_v43  ;;  %p866_p4 = pnand %p865_p3, %p861_p13 }
  0x35   : > { %533 = vst [vmem:[%s1030_s17 + $0x48] sm:$0xff] %v405_v33  ;;  %v175_v50 = vld [vmem:[%s1014_s24 + $0x118] sm:$0xff]  ;;  %v176_v52 = vld [vmem:[%s1014_s24 + $0x120] sm:$0xff]  ;;  %v177_v53 = vld [vmem:[%s1014_s24 + $0x128] sm:$0xff]  ;;  %v412_v54 = vpack.c.bf16 %v173_v47, %v172_v46 }
  0x36   : > { %534 = vst [vmem:[%s1030_s17 + $0x50] sm:$0xff] %v406_v36  ;;  %v178_v55 = vld [vmem:[%s1014_s24 + $0x130] sm:$0xff]  ;;  %v179_v56 = vld [vmem:[%s1014_s24 + $0x138] sm:$0xff]  ;;  %v413_v57 = vpack.c.bf16 %v175_v50, %v174_v49  ;;  %v180_v58 = vld [vmem:[%s1014_s24 + $0x140] sm:$0xff]  ;;  %v414_v60 = vpack.c.bf16 %v177_v53, %v176_v52 }
  0x37   : > { %535 = vst [vmem:[%s1030_s17 + $0x58] sm:$0xff] %v407_v39  ;;  %v181_v59 = vld [vmem:[%s1014_s24 + $0x148] sm:$0xff]  ;;  %v182_v61 = vld [vmem:[%s1014_s24 + $0x150] sm:$0xff]  ;;  %v183_v62 = vld [vmem:[%s1014_s24 + $0x158] sm:$0xff]  ;;  %v415_v63 = vpack.c.bf16 %v179_v56, %v178_v55 }
  0x38   : > { %536 = vst [vmem:[%s1030_s17 + $0x60] sm:$0xff] %v408_v42  ;;  %v184_v0 = vld [vmem:[%s1014_s24 + $0x160] sm:$0xff]  ;;  %v185_v1 = vld [vmem:[%s1014_s24 + $0x168] sm:$0xff]  ;;  %v416_v2 = vpack.c.bf16 %v181_v59, %v180_v58  ;;  %v186_v3 = vld [vmem:[%s1014_s24 + $0x170] sm:$0xff]  ;;  %v417_v5 = vpack.c.bf16 %v183_v62, %v182_v61 }
  0x39   : > { %537 = vst [vmem:[%s1030_s17 + $0x68] sm:$0xff] %v409_v45  ;;  %v187_v4 = vld [vmem:[%s1014_s24 + $0x178] sm:$0xff]  ;;  %v188_v6 = vld [vmem:[%s1014_s24 + $0x180] sm:$0xff]  ;;  %v189_v7 = vld [vmem:[%s1014_s24 + $0x188] sm:$0xff]  ;;  %v418_v8 = vpack.c.bf16 %v185_v1, %v184_v0 }
  0x3a   : > { %538 = vst [vmem:[%s1030_s17 + $0x70] sm:$0xff] %v410_v48  ;;  %v190_v9 = vld [vmem:[%s1014_s24 + $0x190] sm:$0xff]  ;;  %v191_v10 = vld [vmem:[%s1014_s24 + $0x198] sm:$0xff]  ;;  %v419_v11 = vpack.c.bf16 %v187_v4, %v186_v3  ;;  %v192_v12 = vld [vmem:[%s1014_s24 + $0x1a0] sm:$0xff]  ;;  %v420_v14 = vpack.c.bf16 %v189_v7, %v188_v6 }
  0x3b   : > { %539 = vst [vmem:[%s1030_s17 + $0x78] sm:$0xff] %v411_v51  ;;  %v193_v13 = vld [vmem:[%s1014_s24 + $0x1a8] sm:$0xff]  ;;  %v194_v15 = vld [vmem:[%s1014_s24 + $0x1b0] sm:$0xff]  ;;  %v195_v16 = vld [vmem:[%s1014_s24 + $0x1b8] sm:$0xff]  ;;  %v421_v17 = vpack.c.bf16 %v191_v10, %v190_v9 }
  0x3c   : > { %540 = vst [vmem:[%s1030_s17 + $0x80] sm:$0xff] %v412_v54  ;;  %v196_v18 = vld [vmem:[%s1014_s24 + $0x1c0] sm:$0xff]  ;;  %v197_v19 = vld [vmem:[%s1014_s24 + $0x1c8] sm:$0xff]  ;;  %v422_v20 = vpack.c.bf16 %v193_v13, %v192_v12  ;;  %v198_v21 = vld [vmem:[%s1014_s24 + $0x1d0] sm:$0xff]  ;;  %v423_v23 = vpack.c.bf16 %v195_v16, %v194_v15 }
  0x3d   : > { %541 = vst [vmem:[%s1030_s17 + $0x88] sm:$0xff] %v413_v57  ;;  %v199_v22 = vld [vmem:[%s1014_s24 + $0x1d8] sm:$0xff]  ;;  %v200_v24 = vld [vmem:[%s1014_s24 + $0x1e0] sm:$0xff]  ;;  %v201_v25 = vld [vmem:[%s1014_s24 + $0x1e8] sm:$0xff]  ;;  %v424_v26 = vpack.c.bf16 %v197_v19, %v196_v18 }
  0x3e   : > { %542 = vst [vmem:[%s1030_s17 + $0x90] sm:$0xff] %v414_v60  ;;  %v202_v27 = vld [vmem:[%s1014_s24 + $0x1f0] sm:$0xff]  ;;  %v203_v28 = vld [vmem:[%s1014_s24 + $0x1f8] sm:$0xff]  ;;  %v425_v29 = vpack.c.bf16 %v199_v22, %v198_v21  ;;  %v204_v30 = vld [vmem:[%s1014_s24 + $0x200] sm:$0xff]  ;;  %v426_v32 = vpack.c.bf16 %v201_v25, %v200_v24 }
  0x3f   : > { %543 = vst [vmem:[%s1030_s17 + $0x98] sm:$0xff] %v415_v63  ;;  %v205_v31 = vld [vmem:[%s1014_s24 + $0x208] sm:$0xff]  ;;  %v206_v33 = vld [vmem:[%s1014_s24 + $0x210] sm:$0xff]  ;;  %v207_v34 = vld [vmem:[%s1014_s24 + $0x218] sm:$0xff]  ;;  %v427_v35 = vpack.c.bf16 %v203_v28, %v202_v27 }
  0x40   : > { %544 = vst [vmem:[%s1030_s17 + $0xa0] sm:$0xff] %v416_v2  ;;  %v208_v36 = vld [vmem:[%s1014_s24 + $0x220] sm:$0xff]  ;;  %v209_v37 = vld [vmem:[%s1014_s24 + $0x228] sm:$0xff]  ;;  %v428_v38 = vpack.c.bf16 %v205_v31, %v204_v30  ;;  %v210_v39 = vld [vmem:[%s1014_s24 + $0x230] sm:$0xff]  ;;  %v429_v41 = vpack.c.bf16 %v207_v34, %v206_v33 }
  0x41   : > { %545 = vst [vmem:[%s1030_s17 + $0xa8] sm:$0xff] %v417_v5  ;;  %v211_v40 = vld [vmem:[%s1014_s24 + $0x238] sm:$0xff]  ;;  %v212_v42 = vld [vmem:[%s1014_s24 + $0x240] sm:$0xff]  ;;  %v213_v43 = vld [vmem:[%s1014_s24 + $0x248] sm:$0xff]  ;;  %v430_v44 = vpack.c.bf16 %v209_v37, %v208_v36 }
  0x42   : > { %546 = vst [vmem:[%s1030_s17 + $0xb0] sm:$0xff] %v418_v8  ;;  %v214_v45 = vld [vmem:[%s1014_s24 + $0x250] sm:$0xff]  ;;  %v215_v46 = vld [vmem:[%s1014_s24 + $0x258] sm:$0xff]  ;;  %v431_v47 = vpack.c.bf16 %v211_v40, %v210_v39  ;;  %v216_v48 = vld [vmem:[%s1014_s24 + $0x260] sm:$0xff]  ;;  %v432_v50 = vpack.c.bf16 %v213_v43, %v212_v42 }
  0x43   : > { %547 = vst [vmem:[%s1030_s17 + $0xb8] sm:$0xff] %v419_v11  ;;  %v217_v49 = vld [vmem:[%s1014_s24 + $0x268] sm:$0xff]  ;;  %v218_v51 = vld [vmem:[%s1014_s24 + $0x270] sm:$0xff]  ;;  %v219_v52 = vld [vmem:[%s1014_s24 + $0x278] sm:$0xff]  ;;  %v433_v53 = vpack.c.bf16 %v215_v46, %v214_v45 }
  0x44   : > { %548 = vst [vmem:[%s1030_s17 + $0xc0] sm:$0xff] %v420_v14  ;;  %v220_v54 = vld [vmem:[%s1014_s24 + $0x280] sm:$0xff]  ;;  %v221_v55 = vld [vmem:[%s1014_s24 + $0x288] sm:$0xff]  ;;  %v434_v56 = vpack.c.bf16 %v217_v49, %v216_v48  ;;  %v222_v57 = vld [vmem:[%s1014_s24 + $0x290] sm:$0xff]  ;;  %v435_v59 = vpack.c.bf16 %v219_v52, %v218_v51 }
  0x45   : > { %549 = vst [vmem:[%s1030_s17 + $0xc8] sm:$0xff] %v421_v17  ;;  %v223_v58 = vld [vmem:[%s1014_s24 + $0x298] sm:$0xff]  ;;  %v224_v60 = vld [vmem:[%s1014_s24 + $0x2a0] sm:$0xff]  ;;  %v225_v61 = vld [vmem:[%s1014_s24 + $0x2a8] sm:$0xff]  ;;  %v436_v62 = vpack.c.bf16 %v221_v55, %v220_v54 }
  0x46   : > { %550 = vst [vmem:[%s1030_s17 + $0xd0] sm:$0xff] %v422_v20  ;;  %v226_v63 = vld [vmem:[%s1014_s24 + $0x2b0] sm:$0xff]  ;;  %v227_v0 = vld [vmem:[%s1014_s24 + $0x2b8] sm:$0xff]  ;;  %v437_v1 = vpack.c.bf16 %v223_v58, %v222_v57  ;;  %v228_v2 = vld [vmem:[%s1014_s24 + $0x2c0] sm:$0xff]  ;;  %v438_v4 = vpack.c.bf16 %v225_v61, %v224_v60 }
  0x47   : > { %551 = vst [vmem:[%s1030_s17 + $0xd8] sm:$0xff] %v423_v23  ;;  %v229_v3 = vld [vmem:[%s1014_s24 + $0x2c8] sm:$0xff]  ;;  %v230_v5 = vld [vmem:[%s1014_s24 + $0x2d0] sm:$0xff]  ;;  %v231_v6 = vld [vmem:[%s1014_s24 + $0x2d8] sm:$0xff]  ;;  %v439_v7 = vpack.c.bf16 %v227_v0, %v226_v63 }
  0x48   : > { %552 = vst [vmem:[%s1030_s17 + $0xe0] sm:$0xff] %v424_v26  ;;  %v232_v8 = vld [vmem:[%s1014_s24 + $0x2e0] sm:$0xff]  ;;  %v233_v9 = vld [vmem:[%s1014_s24 + $0x2e8] sm:$0xff]  ;;  %v440_v10 = vpack.c.bf16 %v229_v3, %v228_v2  ;;  %v234_v11 = vld [vmem:[%s1014_s24 + $0x2f0] sm:$0xff]  ;;  %v441_v13 = vpack.c.bf16 %v231_v6, %v230_v5 }
  0x49   : > { %553 = vst [vmem:[%s1030_s17 + $0xe8] sm:$0xff] %v425_v29  ;;  %v235_v12 = vld [vmem:[%s1014_s24 + $0x2f8] sm:$0xff]  ;;  %v236_v14 = vld [vmem:[%s1014_s24 + $0x300] sm:$0xff]  ;;  %v237_v15 = vld [vmem:[%s1014_s24 + $0x308] sm:$0xff]  ;;  %v442_v16 = vpack.c.bf16 %v233_v9, %v232_v8 }
  0x4a   : > { %554 = vst [vmem:[%s1030_s17 + $0xf0] sm:$0xff] %v426_v32  ;;  %v238_v17 = vld [vmem:[%s1014_s24 + $0x310] sm:$0xff]  ;;  %v239_v18 = vld [vmem:[%s1014_s24 + $0x318] sm:$0xff]  ;;  %v443_v19 = vpack.c.bf16 %v235_v12, %v234_v11  ;;  %v240_v20 = vld [vmem:[%s1014_s24 + $0x320] sm:$0xff]  ;;  %v444_v22 = vpack.c.bf16 %v237_v15, %v236_v14 }
  0x4b   : > { %555 = vst [vmem:[%s1030_s17 + $0xf8] sm:$0xff] %v427_v35  ;;  %v241_v21 = vld [vmem:[%s1014_s24 + $0x328] sm:$0xff]  ;;  %v242_v23 = vld [vmem:[%s1014_s24 + $0x330] sm:$0xff]  ;;  %v243_v24 = vld [vmem:[%s1014_s24 + $0x338] sm:$0xff]  ;;  %v445_v25 = vpack.c.bf16 %v239_v18, %v238_v17 }
  0x4c   : > { %556 = vst [vmem:[%s1030_s17 + $0x100] sm:$0xff] %v428_v38  ;;  %v244_v26 = vld [vmem:[%s1014_s24 + $0x340] sm:$0xff]  ;;  %v245_v27 = vld [vmem:[%s1014_s24 + $0x348] sm:$0xff]  ;;  %v446_v28 = vpack.c.bf16 %v241_v21, %v240_v20  ;;  %v246_v29 = vld [vmem:[%s1014_s24 + $0x350] sm:$0xff]  ;;  %v447_v31 = vpack.c.bf16 %v243_v24, %v242_v23 }
  0x4d   : > { %557 = vst [vmem:[%s1030_s17 + $0x108] sm:$0xff] %v429_v41  ;;  %v247_v30 = vld [vmem:[%s1014_s24 + $0x358] sm:$0xff]  ;;  %v248_v32 = vld [vmem:[%s1014_s24 + $0x360] sm:$0xff]  ;;  %v249_v33 = vld [vmem:[%s1014_s24 + $0x368] sm:$0xff]  ;;  %v448_v34 = vpack.c.bf16 %v245_v27, %v244_v26 }
  0x4e   : > { %558 = vst [vmem:[%s1030_s17 + $0x110] sm:$0xff] %v430_v44  ;;  %v250_v35 = vld [vmem:[%s1014_s24 + $0x370] sm:$0xff]  ;;  %v251_v36 = vld [vmem:[%s1014_s24 + $0x378] sm:$0xff]  ;;  %v449_v37 = vpack.c.bf16 %v247_v30, %v246_v29  ;;  %v252_v38 = vld [vmem:[%s1014_s24 + $0x380] sm:$0xff]  ;;  %v450_v40 = vpack.c.bf16 %v249_v33, %v248_v32 }
  0x4f   : > { %559 = vst [vmem:[%s1030_s17 + $0x118] sm:$0xff] %v431_v47  ;;  %v253_v39 = vld [vmem:[%s1014_s24 + $0x388] sm:$0xff]  ;;  %v254_v41 = vld [vmem:[%s1014_s24 + $0x390] sm:$0xff]  ;;  %v255_v42 = vld [vmem:[%s1014_s24 + $0x398] sm:$0xff]  ;;  %v451_v43 = vpack.c.bf16 %v251_v36, %v250_v35 }
  0x50   : > { %560 = vst [vmem:[%s1030_s17 + $0x120] sm:$0xff] %v432_v50  ;;  %v256_v44 = vld [vmem:[%s1014_s24 + $0x3a0] sm:$0xff]  ;;  %v257_v45 = vld [vmem:[%s1014_s24 + $0x3a8] sm:$0xff]  ;;  %v452_v46 = vpack.c.bf16 %v253_v39, %v252_v38  ;;  %v258_v47 = vld [vmem:[%s1014_s24 + $0x3b0] sm:$0xff]  ;;  %v453_v49 = vpack.c.bf16 %v255_v42, %v254_v41 }
  0x51   : > { %561 = vst [vmem:[%s1030_s17 + $0x128] sm:$0xff] %v433_v53  ;;  %v259_v48 = vld [vmem:[%s1014_s24 + $0x3b8] sm:$0xff]  ;;  %v260_v50 = vld [vmem:[%s1014_s24 + $0x3c0] sm:$0xff]  ;;  %v261_v51 = vld [vmem:[%s1014_s24 + $0x3c8] sm:$0xff]  ;;  %v454_v52 = vpack.c.bf16 %v257_v45, %v256_v44 }
  0x52   : > { %562 = vst [vmem:[%s1030_s17 + $0x130] sm:$0xff] %v434_v56  ;;  %v262_v53 = vld [vmem:[%s1014_s24 + $0x3d0] sm:$0xff]  ;;  %v263_v54 = vld [vmem:[%s1014_s24 + $0x3d8] sm:$0xff]  ;;  %v455_v55 = vpack.c.bf16 %v259_v48, %v258_v47  ;;  %v264_v56 = vld [vmem:[%s1014_s24 + $0x3e0] sm:$0xff]  ;;  %v456_v58 = vpack.c.bf16 %v261_v51, %v260_v50 }
  0x53   : > { %563 = vst [vmem:[%s1030_s17 + $0x138] sm:$0xff] %v435_v59  ;;  %v265_v57 = vld [vmem:[%s1014_s24 + $0x3e8] sm:$0xff]  ;;  %v266_v59 = vld [vmem:[%s1014_s24 + $0x3f0] sm:$0xff]  ;;  %v267_v60 = vld [vmem:[%s1014_s24 + $0x3f8] sm:$0xff]  ;;  %v457_v61 = vpack.c.bf16 %v263_v54, %v262_v53 }
  0x54   : > { %564 = vst [vmem:[%s1030_s17 + $0x140] sm:$0xff] %v436_v62  ;;  %v268_v62 = vld [vmem:[%s1014_s24 + $0x400] sm:$0xff]  ;;  %v269_v63 = vld [vmem:[%s1014_s24 + $0x408] sm:$0xff]  ;;  %v458_v0 = vpack.c.bf16 %v265_v57, %v264_v56  ;;  %v271_v2 = vld [vmem:[%s1014_s24 + $0x418] sm:$0xff]  ;;  %v459_v3 = vpack.c.bf16 %v267_v60, %v266_v59 }
  0x55   : > { %565 = vst [vmem:[%s1030_s17 + $0x148] sm:$0xff] %v437_v1  ;;  %v270_v1 = vld [vmem:[%s1014_s24 + $0x410] sm:$0xff]  ;;  %v273_v5 = vld [vmem:[%s1014_s24 + $0x428] sm:$0xff]  ;;  %v460_v6 = vpack.c.bf16 %v269_v63, %v268_v62  ;;  %v275_v8 = vld [vmem:[%s1014_s24 + $0x438] sm:$0xff] }
  0x56   : > { %566 = vst [vmem:[%s1030_s17 + $0x150] sm:$0xff] %v438_v4  ;;  %v272_v4 = vld [vmem:[%s1014_s24 + $0x420] sm:$0xff]  ;;  %v461_v9 = vpack.c.bf16 %v271_v2, %v270_v1  ;;  %v277_v11 = vld [vmem:[%s1014_s24 + $0x448] sm:$0xff]  ;;  %v279_v14 = vld [vmem:[%s1014_s24 + $0x458] sm:$0xff] }
  0x57   : > { %567 = vst [vmem:[%s1030_s17 + $0x158] sm:$0xff] %v439_v7  ;;  %v274_v7 = vld [vmem:[%s1014_s24 + $0x430] sm:$0xff]  ;;  %v462_v12 = vpack.c.bf16 %v273_v5, %v272_v4  ;;  %v281_v17 = vld [vmem:[%s1014_s24 + $0x468] sm:$0xff]  ;;  %v283_v20 = vld [vmem:[%s1014_s24 + $0x478] sm:$0xff] }
  0x58   : > { %568 = vst [vmem:[%s1030_s17 + $0x160] sm:$0xff] %v440_v10  ;;  %v276_v10 = vld [vmem:[%s1014_s24 + $0x440] sm:$0xff]  ;;  %v463_v15 = vpack.c.bf16 %v275_v8, %v274_v7  ;;  %v285_v23 = vld [vmem:[%s1014_s24 + $0x488] sm:$0xff]  ;;  %v287_v26 = vld [vmem:[%s1014_s24 + $0x498] sm:$0xff] }
  0x59   : > { %569 = vst [vmem:[%s1030_s17 + $0x168] sm:$0xff] %v441_v13  ;;  %v278_v13 = vld [vmem:[%s1014_s24 + $0x450] sm:$0xff]  ;;  %v464_v18 = vpack.c.bf16 %v277_v11, %v276_v10  ;;  %v289_v29 = vld [vmem:[%s1014_s24 + $0x4a8] sm:$0xff]  ;;  %v291_v32 = vld [vmem:[%s1014_s24 + $0x4b8] sm:$0xff] }
  0x5a   : > { %570 = vst [vmem:[%s1030_s17 + $0x170] sm:$0xff] %v442_v16  ;;  %v280_v16 = vld [vmem:[%s1014_s24 + $0x460] sm:$0xff]  ;;  %v465_v21 = vpack.c.bf16 %v279_v14, %v278_v13  ;;  %v293_v35 = vld [vmem:[%s1014_s24 + $0x4c8] sm:$0xff]  ;;  %v295_v38 = vld [vmem:[%s1014_s24 + $0x4d8] sm:$0xff] }
  0x5b   : > { %571 = vst [vmem:[%s1030_s17 + $0x178] sm:$0xff] %v443_v19  ;;  %v282_v19 = vld [vmem:[%s1014_s24 + $0x470] sm:$0xff]  ;;  %v466_v24 = vpack.c.bf16 %v281_v17, %v280_v16  ;;  %v297_v41 = vld [vmem:[%s1014_s24 + $0x4e8] sm:$0xff]  ;;  %v299_v44 = vld [vmem:[%s1014_s24 + $0x4f8] sm:$0xff] }
  0x5c   : > { %572 = vst [vmem:[%s1030_s17 + $0x180] sm:$0xff] %v444_v22  ;;  %v284_v22 = vld [vmem:[%s1014_s24 + $0x480] sm:$0xff]  ;;  %v467_v27 = vpack.c.bf16 %v283_v20, %v282_v19  ;;  %v301_v47 = vld [vmem:[%s1014_s24 + $0x508] sm:$0xff]  ;;  %v303_v50 = vld [vmem:[%s1014_s24 + $0x518] sm:$0xff] }
  0x5d   : > { %573 = vst [vmem:[%s1030_s17 + $0x188] sm:$0xff] %v445_v25  ;;  %v286_v25 = vld [vmem:[%s1014_s24 + $0x490] sm:$0xff]  ;;  %v468_v30 = vpack.c.bf16 %v285_v23, %v284_v22  ;;  %v305_v53 = vld [vmem:[%s1014_s24 + $0x528] sm:$0xff]  ;;  %v307_v56 = vld [vmem:[%s1014_s24 + $0x538] sm:$0xff] }
  0x5e   : > { %574 = vst [vmem:[%s1030_s17 + $0x190] sm:$0xff] %v446_v28  ;;  %v288_v28 = vld [vmem:[%s1014_s24 + $0x4a0] sm:$0xff]  ;;  %v469_v33 = vpack.c.bf16 %v287_v26, %v286_v25  ;;  %v309_v59 = vld [vmem:[%s1014_s24 + $0x548] sm:$0xff]  ;;  %v311_v62 = vld [vmem:[%s1014_s24 + $0x558] sm:$0xff] }
  0x5f   : > { %575 = vst [vmem:[%s1030_s17 + $0x198] sm:$0xff] %v447_v31  ;;  %v290_v31 = vld [vmem:[%s1014_s24 + $0x4b0] sm:$0xff]  ;;  %v470_v36 = vpack.c.bf16 %v289_v29, %v288_v28  ;;  %v313_v1 = vld [vmem:[%s1014_s24 + $0x568] sm:$0xff]  ;;  %v315_v4 = vld [vmem:[%s1014_s24 + $0x578] sm:$0xff] }
  0x60   : > { %576 = vst [vmem:[%s1030_s17 + $0x1a0] sm:$0xff] %v448_v34  ;;  %v292_v34 = vld [vmem:[%s1014_s24 + $0x4c0] sm:$0xff]  ;;  %v471_v39 = vpack.c.bf16 %v291_v32, %v290_v31  ;;  %v317_v7 = vld [vmem:[%s1014_s24 + $0x588] sm:$0xff]  ;;  %v319_v10 = vld [vmem:[%s1014_s24 + $0x598] sm:$0xff] }
  0x61   : > { %577 = vst [vmem:[%s1030_s17 + $0x1a8] sm:$0xff] %v449_v37  ;;  %v294_v37 = vld [vmem:[%s1014_s24 + $0x4d0] sm:$0xff]  ;;  %v472_v42 = vpack.c.bf16 %v293_v35, %v292_v34  ;;  %v321_v13 = vld [vmem:[%s1014_s24 + $0x5a8] sm:$0xff]  ;;  %v323_v16 = vld [vmem:[%s1014_s24 + $0x5b8] sm:$0xff] }
  0x62   : > { %578 = vst [vmem:[%s1030_s17 + $0x1b0] sm:$0xff] %v450_v40  ;;  %v296_v40 = vld [vmem:[%s1014_s24 + $0x4e0] sm:$0xff]  ;;  %v473_v45 = vpack.c.bf16 %v295_v38, %v294_v37  ;;  %v325_v19 = vld [vmem:[%s1014_s24 + $0x5c8] sm:$0xff]  ;;  %v327_v22 = vld [vmem:[%s1014_s24 + $0x5d8] sm:$0xff] }
  0x63   : > { %579 = vst [vmem:[%s1030_s17 + $0x1b8] sm:$0xff] %v451_v43  ;;  %v298_v43 = vld [vmem:[%s1014_s24 + $0x4f0] sm:$0xff]  ;;  %v474_v48 = vpack.c.bf16 %v297_v41, %v296_v40  ;;  %v329_v25 = vld [vmem:[%s1014_s24 + $0x5e8] sm:$0xff]  ;;  %v331_v28 = vld [vmem:[%s1014_s24 + $0x5f8] sm:$0xff] }
  0x64   : > { %580 = vst [vmem:[%s1030_s17 + $0x1c0] sm:$0xff] %v452_v46  ;;  %v300_v46 = vld [vmem:[%s1014_s24 + $0x500] sm:$0xff]  ;;  %v475_v51 = vpack.c.bf16 %v299_v44, %v298_v43  ;;  %v333_v31 = vld [vmem:[%s1014_s24 + $0x608] sm:$0xff]  ;;  %v335_v34 = vld [vmem:[%s1014_s24 + $0x618] sm:$0xff] }
  0x65   : > { %581 = vst [vmem:[%s1030_s17 + $0x1c8] sm:$0xff] %v453_v49  ;;  %v302_v49 = vld [vmem:[%s1014_s24 + $0x510] sm:$0xff]  ;;  %v476_v54 = vpack.c.bf16 %v301_v47, %v300_v46  ;;  %v337_v37 = vld [vmem:[%s1014_s24 + $0x628] sm:$0xff]  ;;  %v339_v40 = vld [vmem:[%s1014_s24 + $0x638] sm:$0xff] }
  0x66   : > { %582 = vst [vmem:[%s1030_s17 + $0x1d0] sm:$0xff] %v454_v52  ;;  %v304_v52 = vld [vmem:[%s1014_s24 + $0x520] sm:$0xff]  ;;  %v477_v57 = vpack.c.bf16 %v303_v50, %v302_v49  ;;  %v341_v43 = vld [vmem:[%s1014_s24 + $0x648] sm:$0xff]  ;;  %v343_v46 = vld [vmem:[%s1014_s24 + $0x658] sm:$0xff] }
  0x67   : > { %583 = vst [vmem:[%s1030_s17 + $0x1d8] sm:$0xff] %v455_v55  ;;  %v306_v55 = vld [vmem:[%s1014_s24 + $0x530] sm:$0xff]  ;;  %v478_v60 = vpack.c.bf16 %v305_v53, %v304_v52  ;;  %v345_v49 = vld [vmem:[%s1014_s24 + $0x668] sm:$0xff]  ;;  %v347_v52 = vld [vmem:[%s1014_s24 + $0x678] sm:$0xff] }
  0x68   : > { %584 = vst [vmem:[%s1030_s17 + $0x1e0] sm:$0xff] %v456_v58  ;;  %v308_v58 = vld [vmem:[%s1014_s24 + $0x540] sm:$0xff]  ;;  %v479_v63 = vpack.c.bf16 %v307_v56, %v306_v55  ;;  %v349_v55 = vld [vmem:[%s1014_s24 + $0x688] sm:$0xff] }
  0x69   : > { %585 = vst [vmem:[%s1030_s17 + $0x1e8] sm:$0xff] %v457_v61  ;;  %v310_v61 = vld [vmem:[%s1014_s24 + $0x550] sm:$0xff]  ;;  %v480_v2 = vpack.c.bf16 %v309_v59, %v308_v58  ;;  %v351_v58 = vld [vmem:[%s1014_s24 + $0x698] sm:$0xff] }
  0x6a   : > { %586 = vst [vmem:[%s1030_s17 + $0x1f0] sm:$0xff] %v458_v0  ;;  %v312_v0 = vld [vmem:[%s1014_s24 + $0x560] sm:$0xff]  ;;  %v481_v5 = vpack.c.bf16 %v311_v62, %v310_v61  ;;  %v353_v61 = vld [vmem:[%s1014_s24 + $0x6a8] sm:$0xff] }
  0x6b   : > { %587 = vst [vmem:[%s1030_s17 + $0x1f8] sm:$0xff] %v459_v3  ;;  %v314_v3 = vld [vmem:[%s1014_s24 + $0x570] sm:$0xff]  ;;  %v482_v8 = vpack.c.bf16 %v313_v1, %v312_v0  ;;  %v355_v0 = vld [vmem:[%s1014_s24 + $0x6b8] sm:$0xff] }
  0x6c   : > { %588 = vst [vmem:[%s1030_s17 + $0x200] sm:$0xff] %v460_v6  ;;  %v316_v6 = vld [vmem:[%s1014_s24 + $0x580] sm:$0xff]  ;;  %v483_v11 = vpack.c.bf16 %v315_v4, %v314_v3  ;;  %v357_v3 = vld [vmem:[%s1014_s24 + $0x6c8] sm:$0xff] }
  0x6d   : > { %589 = vst [vmem:[%s1030_s17 + $0x208] sm:$0xff] %v461_v9  ;;  %v318_v9 = vld [vmem:[%s1014_s24 + $0x590] sm:$0xff]  ;;  %v484_v14 = vpack.c.bf16 %v317_v7, %v316_v6  ;;  %v359_v6 = vld [vmem:[%s1014_s24 + $0x6d8] sm:$0xff] }
  0x6e   : > { %590 = vst [vmem:[%s1030_s17 + $0x210] sm:$0xff] %v462_v12  ;;  %v320_v12 = vld [vmem:[%s1014_s24 + $0x5a0] sm:$0xff]  ;;  %v485_v17 = vpack.c.bf16 %v319_v10, %v318_v9  ;;  %v361_v9 = vld [vmem:[%s1014_s24 + $0x6e8] sm:$0xff] }
  0x6f   : > { %591 = vst [vmem:[%s1030_s17 + $0x218] sm:$0xff] %v463_v15  ;;  %v322_v15 = vld [vmem:[%s1014_s24 + $0x5b0] sm:$0xff]  ;;  %v486_v20 = vpack.c.bf16 %v321_v13, %v320_v12  ;;  %v363_v12 = vld [vmem:[%s1014_s24 + $0x6f8] sm:$0xff] }
  0x70   : > { %592 = vst [vmem:[%s1030_s17 + $0x220] sm:$0xff] %v464_v18  ;;  %v324_v18 = vld [vmem:[%s1014_s24 + $0x5c0] sm:$0xff]  ;;  %v487_v23 = vpack.c.bf16 %v323_v16, %v322_v15  ;;  %v365_v15 = vld [vmem:[%s1014_s24 + $0x708] sm:$0xff] }
  0x71   : > { %593 = vst [vmem:[%s1030_s17 + $0x228] sm:$0xff] %v465_v21  ;;  %v326_v21 = vld [vmem:[%s1014_s24 + $0x5d0] sm:$0xff]  ;;  %v488_v26 = vpack.c.bf16 %v325_v19, %v324_v18  ;;  %v367_v18 = vld [vmem:[%s1014_s24 + $0x718] sm:$0xff] }
  0x72   : > { %594 = vst [vmem:[%s1030_s17 + $0x230] sm:$0xff] %v466_v24  ;;  %v328_v24 = vld [vmem:[%s1014_s24 + $0x5e0] sm:$0xff]  ;;  %v489_v29 = vpack.c.bf16 %v327_v22, %v326_v21  ;;  %v369_v21 = vld [vmem:[%s1014_s24 + $0x728] sm:$0xff] }
  0x73   : > { %595 = vst [vmem:[%s1030_s17 + $0x238] sm:$0xff] %v467_v27  ;;  %v330_v27 = vld [vmem:[%s1014_s24 + $0x5f0] sm:$0xff]  ;;  %v490_v32 = vpack.c.bf16 %v329_v25, %v328_v24  ;;  %v371_v24 = vld [vmem:[%s1014_s24 + $0x738] sm:$0xff] }
  0x74   : > { %596 = vst [vmem:[%s1030_s17 + $0x240] sm:$0xff] %v468_v30  ;;  %v332_v30 = vld [vmem:[%s1014_s24 + $0x600] sm:$0xff]  ;;  %v491_v35 = vpack.c.bf16 %v331_v28, %v330_v27  ;;  %v373_v27 = vld [vmem:[%s1014_s24 + $0x748] sm:$0xff] }
  0x75   : > { %597 = vst [vmem:[%s1030_s17 + $0x248] sm:$0xff] %v469_v33  ;;  %v334_v33 = vld [vmem:[%s1014_s24 + $0x610] sm:$0xff]  ;;  %v492_v38 = vpack.c.bf16 %v333_v31, %v332_v30  ;;  %v375_v30 = vld [vmem:[%s1014_s24 + $0x758] sm:$0xff] }
  0x76   : > { %598 = vst [vmem:[%s1030_s17 + $0x250] sm:$0xff] %v470_v36  ;;  %v336_v36 = vld [vmem:[%s1014_s24 + $0x620] sm:$0xff]  ;;  %v493_v41 = vpack.c.bf16 %v335_v34, %v334_v33  ;;  %v377_v33 = vld [vmem:[%s1014_s24 + $0x768] sm:$0xff] }
  0x77   : > { %599 = vst [vmem:[%s1030_s17 + $0x258] sm:$0xff] %v471_v39  ;;  %v338_v39 = vld [vmem:[%s1014_s24 + $0x630] sm:$0xff]  ;;  %v494_v44 = vpack.c.bf16 %v337_v37, %v336_v36  ;;  %v379_v36 = vld [vmem:[%s1014_s24 + $0x778] sm:$0xff] }
  0x78   : > { %600 = vst [vmem:[%s1030_s17 + $0x260] sm:$0xff] %v472_v42  ;;  %v340_v42 = vld [vmem:[%s1014_s24 + $0x640] sm:$0xff]  ;;  %v495_v47 = vpack.c.bf16 %v339_v40, %v338_v39  ;;  %v381_v39 = vld [vmem:[%s1014_s24 + $0x788] sm:$0xff] }
  0x79   : > { %601 = vst [vmem:[%s1030_s17 + $0x268] sm:$0xff] %v473_v45  ;;  %v342_v45 = vld [vmem:[%s1014_s24 + $0x650] sm:$0xff]  ;;  %v496_v50 = vpack.c.bf16 %v341_v43, %v340_v42  ;;  %v383_v42 = vld [vmem:[%s1014_s24 + $0x798] sm:$0xff] }
  0x7a   : > { %602 = vst [vmem:[%s1030_s17 + $0x270] sm:$0xff] %v474_v48  ;;  %v344_v48 = vld [vmem:[%s1014_s24 + $0x660] sm:$0xff]  ;;  %v497_v53 = vpack.c.bf16 %v343_v46, %v342_v45  ;;  %v385_v45 = vld [vmem:[%s1014_s24 + $0x7a8] sm:$0xff] }
  0x7b   : > { %603 = vst [vmem:[%s1030_s17 + $0x278] sm:$0xff] %v475_v51  ;;  %v346_v51 = vld [vmem:[%s1014_s24 + $0x670] sm:$0xff]  ;;  %v498_v56 = vpack.c.bf16 %v345_v49, %v344_v48  ;;  %v387_v48 = vld [vmem:[%s1014_s24 + $0x7b8] sm:$0xff] }
  0x7c   : > { %604 = vst [vmem:[%s1030_s17 + $0x280] sm:$0xff] %v476_v54  ;;  %v348_v54 = vld [vmem:[%s1014_s24 + $0x680] sm:$0xff]  ;;  %v499_v59 = vpack.c.bf16 %v347_v52, %v346_v51  ;;  %v389_v51 = vld [vmem:[%s1014_s24 + $0x7c8] sm:$0xff] }
  0x7d   : > { %605 = vst [vmem:[%s1030_s17 + $0x288] sm:$0xff] %v477_v57  ;;  %v350_v57 = vld [vmem:[%s1014_s24 + $0x690] sm:$0xff]  ;;  %v500_v62 = vpack.c.bf16 %v349_v55, %v348_v54  ;;  %v391_v54 = vld [vmem:[%s1014_s24 + $0x7d8] sm:$0xff] }
  0x7e   : > { %606 = vst [vmem:[%s1030_s17 + $0x290] sm:$0xff] %v478_v60  ;;  %v352_v60 = vld [vmem:[%s1014_s24 + $0x6a0] sm:$0xff]  ;;  %v501_v1 = vpack.c.bf16 %v351_v58, %v350_v57  ;;  %v393_v57 = vld [vmem:[%s1014_s24 + $0x7e8] sm:$0xff] }
  0x7f   : > { %607 = vst [vmem:[%s1030_s17 + $0x298] sm:$0xff] %v479_v63  ;;  %v354_v63 = vld [vmem:[%s1014_s24 + $0x6b0] sm:$0xff]  ;;  %v502_v4 = vpack.c.bf16 %v353_v61, %v352_v60  ;;  %v395_v60 = vld [vmem:[%s1014_s24 + $0x7f8] sm:$0xff] }
  0x80   : > { %608 = vst [vmem:[%s1030_s17 + $0x2a0] sm:$0xff] %v480_v2  ;;  %v356_v2 = vld [vmem:[%s1014_s24 + $0x6c0] sm:$0xff]  ;;  %v503_v7 = vpack.c.bf16 %v355_v0, %v354_v63 }
  0x81   : > { %609 = vst [vmem:[%s1030_s17 + $0x2a8] sm:$0xff] %v481_v5  ;;  %v358_v5 = vld [vmem:[%s1014_s24 + $0x6d0] sm:$0xff]  ;;  %v504_v10 = vpack.c.bf16 %v357_v3, %v356_v2 }
  0x82   : > { %610 = vst [vmem:[%s1030_s17 + $0x2b0] sm:$0xff] %v482_v8  ;;  %v360_v8 = vld [vmem:[%s1014_s24 + $0x6e0] sm:$0xff]  ;;  %v505_v13 = vpack.c.bf16 %v359_v6, %v358_v5 }
  0x83   : > { %611 = vst [vmem:[%s1030_s17 + $0x2b8] sm:$0xff] %v483_v11  ;;  %v362_v11 = vld [vmem:[%s1014_s24 + $0x6f0] sm:$0xff]  ;;  %v506_v16 = vpack.c.bf16 %v361_v9, %v360_v8 }
  0x84   : > { %612 = vst [vmem:[%s1030_s17 + $0x2c0] sm:$0xff] %v484_v14  ;;  %v364_v14 = vld [vmem:[%s1014_s24 + $0x700] sm:$0xff]  ;;  %v507_v19 = vpack.c.bf16 %v363_v12, %v362_v11 }
  0x85   : > { %613 = vst [vmem:[%s1030_s17 + $0x2c8] sm:$0xff] %v485_v17  ;;  %v366_v17 = vld [vmem:[%s1014_s24 + $0x710] sm:$0xff]  ;;  %v508_v22 = vpack.c.bf16 %v365_v15, %v364_v14 }
  0x86   : > { %614 = vst [vmem:[%s1030_s17 + $0x2d0] sm:$0xff] %v486_v20  ;;  %v368_v20 = vld [vmem:[%s1014_s24 + $0x720] sm:$0xff]  ;;  %v509_v25 = vpack.c.bf16 %v367_v18, %v366_v17 }
  0x87   : > { %615 = vst [vmem:[%s1030_s17 + $0x2d8] sm:$0xff] %v487_v23  ;;  %v370_v23 = vld [vmem:[%s1014_s24 + $0x730] sm:$0xff]  ;;  %v510_v28 = vpack.c.bf16 %v369_v21, %v368_v20 }
  0x88   : > { %616 = vst [vmem:[%s1030_s17 + $0x2e0] sm:$0xff] %v488_v26  ;;  %v372_v26 = vld [vmem:[%s1014_s24 + $0x740] sm:$0xff]  ;;  %v511_v31 = vpack.c.bf16 %v371_v24, %v370_v23 }
  0x89   : > { %617 = vst [vmem:[%s1030_s17 + $0x2e8] sm:$0xff] %v489_v29  ;;  %v374_v29 = vld [vmem:[%s1014_s24 + $0x750] sm:$0xff]  ;;  %v512_v34 = vpack.c.bf16 %v373_v27, %v372_v26 }
  0x8a   : > { %618 = vst [vmem:[%s1030_s17 + $0x2f0] sm:$0xff] %v490_v32  ;;  %v376_v32 = vld [vmem:[%s1014_s24 + $0x760] sm:$0xff]  ;;  %v513_v37 = vpack.c.bf16 %v375_v30, %v374_v29 }
  0x8b   : > { %619 = vst [vmem:[%s1030_s17 + $0x2f8] sm:$0xff] %v491_v35  ;;  %v378_v35 = vld [vmem:[%s1014_s24 + $0x770] sm:$0xff]  ;;  %v514_v40 = vpack.c.bf16 %v377_v33, %v376_v32 }
  0x8c   : > { %620 = vst [vmem:[%s1030_s17 + $0x300] sm:$0xff] %v492_v38  ;;  %v380_v38 = vld [vmem:[%s1014_s24 + $0x780] sm:$0xff]  ;;  %v515_v43 = vpack.c.bf16 %v379_v36, %v378_v35 }
  0x8d   : > { %621 = vst [vmem:[%s1030_s17 + $0x308] sm:$0xff] %v493_v41  ;;  %v382_v41 = vld [vmem:[%s1014_s24 + $0x790] sm:$0xff]  ;;  %v516_v46 = vpack.c.bf16 %v381_v39, %v380_v38 }
  0x8e   : > { %622 = vst [vmem:[%s1030_s17 + $0x310] sm:$0xff] %v494_v44  ;;  %v384_v44 = vld [vmem:[%s1014_s24 + $0x7a0] sm:$0xff]  ;;  %v517_v49 = vpack.c.bf16 %v383_v42, %v382_v41 }
  0x8f   : > { %623 = vst [vmem:[%s1030_s17 + $0x318] sm:$0xff] %v495_v47  ;;  %v386_v47 = vld [vmem:[%s1014_s24 + $0x7b0] sm:$0xff]  ;;  %v518_v52 = vpack.c.bf16 %v385_v45, %v384_v44 }
  0x90   : > { %624 = vst [vmem:[%s1030_s17 + $0x320] sm:$0xff] %v496_v50  ;;  %v388_v50 = vld [vmem:[%s1014_s24 + $0x7c0] sm:$0xff]  ;;  %v519_v55 = vpack.c.bf16 %v387_v48, %v386_v47 }
  0x91   : > { %625 = vst [vmem:[%s1030_s17 + $0x328] sm:$0xff] %v497_v53  ;;  %v390_v53 = vld [vmem:[%s1014_s24 + $0x7d0] sm:$0xff]  ;;  %v520_v58 = vpack.c.bf16 %v389_v51, %v388_v50 }
  0x92   : > { %626 = vst [vmem:[%s1030_s17 + $0x330] sm:$0xff] %v498_v56  ;;  %v392_v56 = vld [vmem:[%s1014_s24 + $0x7e0] sm:$0xff]  ;;  %v521_v61 = vpack.c.bf16 %v391_v54, %v390_v53 }
  0x93   : > { %627 = vst [vmem:[%s1030_s17 + $0x338] sm:$0xff] %v499_v59  ;;  %v394_v59 = vld [vmem:[%s1014_s24 + $0x7f0] sm:$0xff] }
  0x94   : > { %628 = vst [vmem:[%s1030_s17 + $0x340] sm:$0xff] %v500_v62  ;;  %v522_v62 = vpack.c.bf16 %v393_v57, %v392_v56  ;;  %v523_v63 = vpack.c.bf16 %v395_v60, %v394_v59 }
  0x95   : > { %629 = vst [vmem:[%s1030_s17 + $0x348] sm:$0xff] %v501_v1 }
  0x96   : > { %630 = vst [vmem:[%s1030_s17 + $0x350] sm:$0xff] %v502_v4 }
  0x97   : > { %631 = vst [vmem:[%s1030_s17 + $0x358] sm:$0xff] %v503_v7 }
  0x98   : > { %632 = vst [vmem:[%s1030_s17 + $0x360] sm:$0xff] %v504_v10 }
  0x99   : > { %633 = vst [vmem:[%s1030_s17 + $0x368] sm:$0xff] %v505_v13 }
  0x9a   : > { %634 = vst [vmem:[%s1030_s17 + $0x370] sm:$0xff] %v506_v16 }
  0x9b   : > { %635 = vst [vmem:[%s1030_s17 + $0x378] sm:$0xff] %v507_v19 }
  0x9c   : > { %636 = vst [vmem:[%s1030_s17 + $0x380] sm:$0xff] %v508_v22 }
  0x9d   : > { %637 = vst [vmem:[%s1030_s17 + $0x388] sm:$0xff] %v509_v25 }
  0x9e   : > { %638 = vst [vmem:[%s1030_s17 + $0x390] sm:$0xff] %v510_v28 }
  0x9f   : > { %639 = vst [vmem:[%s1030_s17 + $0x398] sm:$0xff] %v511_v31 }
  0xa0   : > { %640 = vst [vmem:[%s1030_s17 + $0x3a0] sm:$0xff] %v512_v34 }
  0xa1   : > { %641 = vst [vmem:[%s1030_s17 + $0x3a8] sm:$0xff] %v513_v37 }
  0xa2   : > { %642 = vst [vmem:[%s1030_s17 + $0x3b0] sm:$0xff] %v514_v40 }
  0xa3   : > { %643 = vst [vmem:[%s1030_s17 + $0x3b8] sm:$0xff] %v515_v43 }
  0xa4   : > { %644 = vst [vmem:[%s1030_s17 + $0x3c0] sm:$0xff] %v516_v46 }
  0xa5   : > { %645 = vst [vmem:[%s1030_s17 + $0x3c8] sm:$0xff] %v517_v49 }
  0xa6   : > { %646 = vst [vmem:[%s1030_s17 + $0x3d0] sm:$0xff] %v518_v52 }
  0xa7   : > { %647 = vst [vmem:[%s1030_s17 + $0x3d8] sm:$0xff] %v519_v55 }
  0xa8   : > { %648 = vst [vmem:[%s1030_s17 + $0x3e0] sm:$0xff] %v520_v58 }
  0xa9   : > { %649 = vst [vmem:[%s1030_s17 + $0x3e8] sm:$0xff] %v521_v61 }
  0xaa   : > { %650 = vst [vmem:[%s1030_s17 + $0x3f0] sm:$0xff] %v522_v62 }
  0xab   : > { %651 = vst [vmem:[%s1030_s17 + $0x3f8] sm:$0xff] %v523_v63 }
  0xac   : > { %869 = shalt.err (!%p866_p4)
}
  0xad   : > { %s912_s20 = smov 1024   ;;  %s913_s21 = smov 64  }
  0xae   : > { %764 = dma.vmem_to_hbm [thread:$0]  (%p974_p11), %s667_s29, 16384, %s669_s30, %s653_s2, %s912_s20, %s912_s20, %s913_s21  }
  0xaf PF: > { %s683_s22 = sand.u32 1, %s896_s6   ;;  %p1448_p7 = scmp.ge.s32.totalorder %s908_s9, 2 }
  0xb0   : > { %s684_s23 = scalar_lea.sflag [#allocation4], %s683_s22 }
  0xb1   : > { %p771_p5 = pnand %p1448_p7, %p978_p12 }
  0xb3   : > { %p772_p8 = pneg %p771_p5 }
  0xb5   : > { %891 = dma.done.wait (%p772_p8), %s684_s23, 16384  }
  0xb6   : > { %893 = vsyncadd (%p772_p8), %s684_s23, 4294950912  ;;  %p14_p10 = scmp.ge.s32.totalorder %s949_s12, 4   ;;  %s1449_s6 = smov %s900_s7 }
  0xb7   : > { %s1450_s7 = smov %s904_s8  ;;  %s1451_s8 = smov %s961_s15 }
  0xb8   : > { %s1452_s9 = smov %s949_s12  ;;  %16 = sbr.rel (!%p14_p10) target bundleno = 5 (0x5), region = 69 }
  0xbd   :  { %690 = vsyncpa [#allocation3], 1 }
  0xbe   :  { %692 = vsyncpa [#allocation3 + $0x1], 1 }
  0xbf   :  { %693 = vsyncpa [#allocation4], 1 }
  0xc0   :  { %695 = vsyncpa [#allocation4 + $0x1], 1 }

</bundles_post_ra>
